<compile_context>
chip_gen: v5e
topology: v5e:2x2
jax: 0.10.0
libtpu: 0.0.40
codegen_flags: <defaults>
</compile_context>

<pallas_src>
import jax
import jax.numpy as jnp
from jax.experimental import pallas as pl
from jax.experimental.pallas import tpu as pltpu


def _round_up(n: int, m: int) -> int:
    return (n + m - 1) // m * m


_VMEM_BUDGET = 40 << 20     # conservative: fits v7x's 64 MiB VMEM w/ headroom
_BUF = 2                    # Pallas double-buffers every BlockSpec'd operand


def _ae_kernel(x_ref, we_ref, be_ref, wd_ref, bd_ref, xhat_ref, z_ref):
    # x_ref   : [TB, Dp] f32  batch tile (streamed per grid step)
    # we_ref  : [Dp, Lp] bf16 encoder weight (resident: constant index map)
    # be_ref  : [1,  Lp] f32  encoder bias
    # wd_ref  : [Lp, Dp] bf16 decoder weight (resident)
    # bd_ref  : [1,  Dp] f32  decoder bias
    # xhat_ref: [TB, Dp] bf16 reconstruction (lane-dense store)
    # z_ref   : [TB, Lp] bf16 latent code (lane-dense store)
    x = x_ref[...].astype(we_ref.dtype)              # f32 -> bf16 in-register

    # ---- encode: z = relu(x @ W_e + b_e) ----  (MXU, f32 accumulation)
    z = jnp.dot(x, we_ref[...], preferred_element_type=jnp.float32)
    z = jnp.maximum(z + be_ref[...], 0.0)
    z_ref[...] = z.astype(z_ref.dtype)

    # ---- decode: x_hat = sigmoid(z @ W_d + b_d) ----
    logits = jnp.dot(z.astype(wd_ref.dtype), wd_ref[...],
                     preferred_element_type=jnp.float32)
    logits = logits + bd_ref[...]
    # sigmoid = 1 / (1 + exp(-x)); exp and the approximate reciprocal both
    # ride the EUP slot -> no VALU Newton steps competing with the store path.
    xhat = pl.reciprocal(1.0 + jnp.exp(-logits), approx=True)
    xhat_ref[...] = xhat.astype(xhat_ref.dtype)


def prepare_params(w_enc, b_enc, w_dec, b_dec):
    """One-time prep (outside the jitted hot path): bf16-cast + lane-pad."""
    D, L = w_enc.shape
    Dp, Lp = _round_up(D, 128), _round_up(L, 128)
    f32, bf16 = jnp.float32, jnp.bfloat16
    we = jnp.pad(w_enc.astype(bf16), ((0, Dp - D), (0, Lp - L)))
    be = jnp.pad(jnp.reshape(b_enc, (1, L)).astype(f32), ((0, 0), (0, Lp - L)))
    wd = jnp.pad(w_dec.astype(bf16), ((0, Lp - L), (0, Dp - D)))
    bd = jnp.pad(jnp.reshape(b_dec, (1, D)).astype(f32), ((0, 0), (0, Dp - D)))
    return we, be, wd, bd


def _pick_batch_tile(B: int, Dp: int, Lp: int) -> int:
    """Batch-tile rows: multiple of 16 (bf16 tile), >= 2 grid tiles for
    mid-size B (v7x megacore), as large as the VMEM budget allows
    (per-grid-step overhead is ~0.35 us, so bigger is better)."""
    wgt_bytes = _BUF * (2 * Dp * Lp * 2 + (Dp + Lp) * 4)
    per_row = _BUF * (Dp * 4 + Dp * 2 + Lp * 2)    # x f32 + xhat bf16 + z bf16
    if wgt_bytes > _VMEM_BUDGET // 2:
        # TODO(synk): very large D*L -> resident-weight scheme does not fit;
        # needs a K-tiled grid axis over Dp with an f32 accumulator (and/or
        # single-buffered resident blocks via pipeline_mode=pl.Buffered(1)).
        raise NotImplementedError(
            "resident weights exceed the VMEM budget; K-tiling not implemented")
    cap = max(16, ((_VMEM_BUDGET - wgt_bytes) // per_row) // 16 * 16)
    if B <= 16:
        tb = _round_up(max(B, 1), 16)
    else:
        # >= 2 tiles so both v7x TensorCores get work; 512 rows already sits
        # near the HBM roofline for mem-bound tiling.
        tb = min(512, _round_up(-(-B // 2), 16))
    return min(tb, cap)


def autoencoder_forward(x_nchw, we, be, wd, bd, *, latent_dim):
    """Fused encode+decode.  x_nchw: [B,C,H,W] f32, pre-padded bf16 weights.

    Returns (x_hat [B,C,H,W] bf16, z [B,latent_dim] bf16).
    """
    B, C, H, W = x_nchw.shape
    D = C * H * W
    Dp, Lp = we.shape
    L = latent_dim

    TB = _pick_batch_tile(B, Dp, Lp)
    Bp = _round_up(B, TB)

    # Keep x in f32; pad only when strictly required (common case: no copy).
    x2d = x_nchw.reshape(B, D)
    if Bp != B or Dp != D:
        x2d = jnp.pad(x2d, ((0, Bp - B), (0, Dp - D)))

    grid = (Bp // TB,)

    # Honest VMEM footprint: buffered streamed tiles + buffered resident
    # weights/biases (no double-counted buffer factor).
    act_bytes = _BUF * TB * (Dp * 4 + Dp * 2 + Lp * 2)
    wgt_bytes = _BUF * (2 * Dp * Lp * 2 + (Dp + Lp) * 4)
    vmem_bytes = min(max(act_bytes + wgt_bytes + (2 << 20), 8 << 20), 48 << 20)

    cost = pl.CostEstimate(
        flops=2 * 2 * Bp * Dp * Lp,                 # encoder + decoder matmul
        transcendentals=2 * Bp * Dp,                # exp + reciprocal
        bytes_accessed=(x2d.size * 4 + we.size * 2 + wd.size * 2
                        + be.size * 4 + bd.size * 4
                        + Bp * Dp * 2 + Bp * Lp * 2),
    )

    bf16 = jnp.bfloat16
    xhat_p, z_p = pl.pallas_call(
        _ae_kernel,
        grid=grid,
        out_shape=(
            jax.ShapeDtypeStruct((Bp, Dp), bf16),   # x_hat (padded, bf16)
            jax.ShapeDtypeStruct((Bp, Lp), bf16),   # z     (padded, bf16)
        ),
        in_specs=[
            pl.BlockSpec((TB, Dp), lambda i: (i, 0)),   # x tile streams
            # Resident blocks (constant index maps).
            # TODO(synk): for very large D*L on v7x, single-buffer these
            # (pipeline_mode=pl.Buffered(1)) or switch to a K-tiled grid.
            pl.BlockSpec((Dp, Lp), lambda i: (0, 0)),   # W_e
            pl.BlockSpec((1, Lp), lambda i: (0, 0)),    # b_e
            pl.BlockSpec((Lp, Dp), lambda i: (0, 0)),   # W_d
            pl.BlockSpec((1, Dp), lambda i: (0, 0)),    # b_d
        ],
        out_specs=(
            pl.BlockSpec((TB, Dp), lambda i: (i, 0)),
            pl.BlockSpec((TB, Lp), lambda i: (i, 0)),
        ),
        compiler_params=pltpu.CompilerParams(
            dimension_semantics=("parallel",),          # megacore split (v7x)
            vmem_limit_bytes=vmem_bytes,
        ),
        cost_estimate=cost,
    )(x2d, we, be, wd, bd)

    xhat2d = xhat_p if (Bp == B and Dp == D) else xhat_p[:B, :D]
    z = z_p if (Bp == B and Lp == L) else z_p[:B, :L]
    return xhat2d.reshape(B, C, H, W), z


def _init_params(key, d_in, d_latent):
    k1, k2, k3, k4 = jax.random.split(key, 4)
    # deterministic small-scale init (mimics nn.Linear uniform fan-in scaling)
    s_e = 1.0 / jnp.sqrt(d_in)
    s_d = 1.0 / jnp.sqrt(d_latent)
    w_enc = jax.random.uniform(k1, (d_in, d_latent), jnp.float32, -s_e, s_e)
    b_enc = jax.random.uniform(k2, (1, d_latent), jnp.float32, -s_e, s_e)
    w_dec = jax.random.uniform(k3, (d_latent, d_in), jnp.float32, -s_d, s_d)
    b_dec = jax.random.uniform(k4, (1, d_in), jnp.float32, -s_d, s_d)
    return w_enc, b_enc, w_dec, b_dec


if __name__ == "__main__":
    key = jax.random.PRNGKey(0)
    kx, kp = jax.random.split(key)

    B, C, H, W = 2, 4, 16, 16
    D = C * H * W          # 1024
    LATENT = 32

    x = jax.random.normal(kx, (B, C, H, W), dtype=jnp.float32)
    w_enc, b_enc, w_dec, b_dec = _init_params(kp, D, LATENT)

    # One-time parameter prep (cast/pad hoisted out of the per-call path).
    we, be, wd, bd = prepare_params(w_enc, b_enc, w_dec, b_dec)

    fwd = jax.jit(autoencoder_forward, static_argnames=("latent_dim",))
    x_hat, z = fwd(x, we, be, wd, bd, latent_dim=LATENT)
    jax.block_until_ready((x_hat, z))

    assert x_hat.shape == (B, C, H, W) and z.shape == (B, LATENT)

    # ---- reference with the same bf16 weight/activation quantization ----
    xb = x.reshape(B, D).astype(jnp.bfloat16)
    web = w_enc.astype(jnp.bfloat16)
    wdb = w_dec.astype(jnp.bfloat16)
    z_ref = jnp.maximum(
        jnp.dot(xb, web, preferred_element_type=jnp.float32) + b_enc, 0.0)
    xh_ref = jax.nn.sigmoid(
        jnp.dot(z_ref.astype(jnp.bfloat16), wdb,
                preferred_element_type=jnp.float32) + b_dec
    ).reshape(B, C, H, W)

    assert jnp.allclose(x_hat.astype(jnp.float32), xh_ref, atol=1e-2), \
        "x_hat mismatch vs bf16 reference"
    assert jnp.allclose(z.astype(jnp.float32), z_ref, rtol=1e-2, atol=2e-2), \
        "latent mismatch vs bf16 reference"

    # loose check vs full-f32 math (bf16 weights/outputs => ~1e-2 drift)
    z_f32 = jnp.maximum(x.reshape(B, D) @ w_enc + b_enc, 0.0)
    xh_f32 = jax.nn.sigmoid(z_f32 @ w_dec + b_dec).reshape(B, C, H, W)
    assert jnp.allclose(x_hat.astype(jnp.float32), xh_f32, atol=5e-2), \
        "drift vs f32 reference"

    print("KERNEL_OK")
</pallas_src>

<mosaic_0001>
module attributes {stable_mosaic.version = 11 : i64} {
  func.func @_ae_kernel(%arg0: i32, %arg1: memref<16x1024xf32, #tpu.memory_space<vmem>>, %arg2: memref<1024x128xbf16, #tpu.memory_space<vmem>>, %arg3: memref<1x128xf32, #tpu.memory_space<vmem>>, %arg4: memref<128x1024xbf16, #tpu.memory_space<vmem>>, %arg5: memref<1x1024xf32, #tpu.memory_space<vmem>>, %arg6: memref<16x1024xbf16, #tpu.memory_space<vmem>>, %arg7: memref<16x128xbf16, #tpu.memory_space<vmem>>) attributes {dimension_semantics = [#tpu.dimension_semantics<parallel>], iteration_bounds = array<i64: 1>, scalar_prefetch = 0 : i64, scratch_operands = 0 : i64, tpu.core_type = #tpu.core_type<tc>, window_params = [{transform_indices = @transform_0, window_bounds = array<i64: 16, 1024>}, {pipeline_mode = #tpu.pipeline_mode<synchronous>, transform_indices = @transform_1, window_bounds = array<i64: 1024, 128>}, {pipeline_mode = #tpu.pipeline_mode<synchronous>, transform_indices = @transform_2, window_bounds = array<i64: 1, 128>}, {pipeline_mode = #tpu.pipeline_mode<synchronous>, transform_indices = @transform_3, window_bounds = array<i64: 128, 1024>}, {pipeline_mode = #tpu.pipeline_mode<synchronous>, transform_indices = @transform_4, window_bounds = array<i64: 1, 1024>}, {transform_indices = @transform_5, window_bounds = array<i64: 16, 1024>}, {transform_indices = @transform_6, window_bounds = array<i64: 16, 128>}]} {
    %c0 = arith.constant 0 : index
    %c0_0 = arith.constant 0 : index
    %0 = vector.load %arg1[%c0, %c0_0] : memref<16x1024xf32, #tpu.memory_space<vmem>>, vector<16x1024xf32>
    %1 = arith.truncf %0 : vector<16x1024xf32> to vector<16x1024xbf16>
    %c0_1 = arith.constant 0 : index
    %c0_2 = arith.constant 0 : index
    %2 = vector.load %arg2[%c0_1, %c0_2] : memref<1024x128xbf16, #tpu.memory_space<vmem>>, vector<1024x128xbf16>
    %cst = arith.constant dense<0.000000e+00> : vector<16x128xf32>
    %3 = tpu.matmul %1, %2, %cst {dimension_numbers = #tpu.dot_dimension_numbers<[1], [0], [0], [1], [0, 0, 1, 1], [], []>} : vector<16x1024xbf16>, vector<1024x128xbf16>, vector<16x128xf32> -> vector<16x128xf32>
    %c0_3 = arith.constant 0 : index
    %c0_4 = arith.constant 0 : index
    %4 = vector.load %arg3[%c0_3, %c0_4] : memref<1x128xf32, #tpu.memory_space<vmem>>, vector<1x128xf32>
    %5 = vector.broadcast %4 : vector<1x128xf32> to vector<16x128xf32>
    %6 = arith.addf %3, %5 : vector<16x128xf32>
    %cst_5 = arith.constant 0.000000e+00 : f32
    %7 = vector.broadcast %cst_5 : f32 to vector<16x128xf32>
    %8 = arith.maximumf %6, %7 : vector<16x128xf32>
    %9 = arith.truncf %8 : vector<16x128xf32> to vector<16x128xbf16>
    %c0_6 = arith.constant 0 : index
    %c0_7 = arith.constant 0 : index
    %10 = vector.load %arg7[%c0_6, %c0_7] : memref<16x128xbf16, #tpu.memory_space<vmem>>, vector<16x128xbf16>
    tpu.vector_store %arg7[%c0_6, %c0_7], %9 {strides = array<i32>} : memref<16x128xbf16, #tpu.memory_space<vmem>>, vector<16x128xbf16>,
    %11 = arith.truncf %8 : vector<16x128xf32> to vector<16x128xbf16>
    %c0_8 = arith.constant 0 : index
    %c0_9 = arith.constant 0 : index
    %12 = vector.load %arg4[%c0_8, %c0_9] : memref<128x1024xbf16, #tpu.memory_space<vmem>>, vector<128x1024xbf16>
    %cst_10 = arith.constant dense<0.000000e+00> : vector<16x1024xf32>
    %13 = tpu.matmul %11, %12, %cst_10 {dimension_numbers = #tpu.dot_dimension_numbers<[1], [0], [0], [1], [0, 0, 1, 1], [], []>} : vector<16x128xbf16>, vector<128x1024xbf16>, vector<16x1024xf32> -> vector<16x1024xf32>
    %c0_11 = arith.constant 0 : index
    %c0_12 = arith.constant 0 : index
    %14 = vector.load %arg5[%c0_11, %c0_12] : memref<1x1024xf32, #tpu.memory_space<vmem>>, vector<1x1024xf32>
    %15 = vector.broadcast %14 : vector<1x1024xf32> to vector<16x1024xf32>
    %16 = arith.addf %13, %15 : vector<16x1024xf32>
    %cst_13 = arith.constant 0.000000e+00 : f32
    %17 = vector.broadcast %cst_13 : f32 to vector<16x1024xf32>
    %18 = arith.subf %17, %16 : vector<16x1024xf32>
    %19 = math.exp %18 : vector<16x1024xf32>
    %cst_14 = arith.constant 1.000000e+00 : f32
    %20 = vector.broadcast %cst_14 : f32 to vector<16x1024xf32>
    %21 = arith.addf %20, %19 : vector<16x1024xf32>
    %22 = tpu.reciprocal %21 {approx = true} : vector<16x1024xf32> -> vector<16x1024xf32>
    %23 = arith.truncf %22 : vector<16x1024xf32> to vector<16x1024xbf16>
    %c0_15 = arith.constant 0 : index
    %c0_16 = arith.constant 0 : index
    %24 = vector.load %arg6[%c0_15, %c0_16] : memref<16x1024xbf16, #tpu.memory_space<vmem>>, vector<16x1024xbf16>
    tpu.vector_store %arg6[%c0_15, %c0_16], %23 {strides = array<i32>} : memref<16x1024xbf16, #tpu.memory_space<vmem>>, vector<16x1024xbf16>,
    return
  }
  func.func @transform_0(%arg0: i32) -> (i32, i32) {
    %c0_i32 = arith.constant 0 : i32
    %c0_i32_0 = arith.constant 0 : i32
    return %arg0, %c0_i32 : i32, i32
  }
  func.func @transform_1(%arg0: i32) -> (i32, i32) {
    %c0_i32 = arith.constant 0 : i32
    %c0_i32_0 = arith.constant 0 : i32
    %c0_i32_1 = arith.constant 0 : i32
    return %c0_i32, %c0_i32_0 : i32, i32
  }
  func.func @transform_2(%arg0: i32) -> (i32, i32) {
    %c0_i32 = arith.constant 0 : i32
    %c0_i32_0 = arith.constant 0 : i32
    %c0_i32_1 = arith.constant 0 : i32
    return %c0_i32, %c0_i32_0 : i32, i32
  }
  func.func @transform_3(%arg0: i32) -> (i32, i32) {
    %c0_i32 = arith.constant 0 : i32
    %c0_i32_0 = arith.constant 0 : i32
    %c0_i32_1 = arith.constant 0 : i32
    return %c0_i32, %c0_i32_0 : i32, i32
  }
  func.func @transform_4(%arg0: i32) -> (i32, i32) {
    %c0_i32 = arith.constant 0 : i32
    %c0_i32_0 = arith.constant 0 : i32
    %c0_i32_1 = arith.constant 0 : i32
    return %c0_i32, %c0_i32_0 : i32, i32
  }
  func.func @transform_5(%arg0: i32) -> (i32, i32) {
    %c0_i32 = arith.constant 0 : i32
    %c0_i32_0 = arith.constant 0 : i32
    return %arg0, %c0_i32 : i32, i32
  }
  func.func @transform_6(%arg0: i32) -> (i32, i32) {
    %c0_i32 = arith.constant 0 : i32
    %c0_i32_0 = arith.constant 0 : i32
    return %arg0, %c0_i32 : i32, i32
  }
}

</mosaic_0001>

<bundles_post_ra>
// kernel: autoencoder_forward.1
= control target key start
LH: loop header
LB: loop body
LE: loop exit
PB: predicated region body
PF: predicated region fallthrough
CT: control target
= control target key end

     0   :  { %12 = vsyncpa [#allocation3], 0  ;;  %s2248_s0 = inlined_call_operand.vmem [shape: f32[16,1024], index: 0, kind: input, shape index: {}]   ;;  %s2249_s1 = inlined_call_operand.hbm [shape: bf16[1024,128], index: 1, kind: input, shape index: {}]   ;;  %s2250_s2 = inlined_call_operand.vmem [shape: f32[1,128], index: 2, kind: input, shape index: {}]   ;;  %s2251_s3 = inlined_call_operand.hbm [shape: bf16[128,1024], index: 3, kind: input, shape index: {}]   ;;  %s2252_s4 = inlined_call_operand.vmem [shape: f32[1,1024], index: 4, kind: input, shape index: {}]   ;;  %s2253_s5 = inlined_call_operand.vmem [shape: bf16[16,1024], index: 5, kind: output, shape index: {0}]   ;;  %s2254_s6 = inlined_call_operand.vmem [shape: bf16[16,128], index: 6, kind: output, shape index: {1}]  }
   0x1   :  { %s20_s23 = sshll.u32 %s2249_s1, 4  ;;  %s21_s23 = int_to_ptr.hbm [resolvable:$true] %s20_s23 }
   0x2   :  { %13 = vsyncpa [#allocation5], 0  ;;  %s2106_s24 = smov [#allocation2]   ;;  %s35_s28 = sshll.u32 %s2251_s3, 4  ;;  %s36_s28 = int_to_ptr.hbm [resolvable:$true] %s35_s28 }
   0x3   :  { %s22_s25 = sshll.u32 %s2106_s24, 4  ;;  %s2107_s29 = smov 64   ;;  %s23_s25 = int_to_ptr.vmem [resolvable:$true] %s22_s25 }
   0x4   :  { %s2108_s30 = smov 4   ;;  %s2109_s7 = smov [#allocation4]  }
   0x5   :  { %28 = dma.hbm_to_vmem [thread:$0]  %s21_s23, 8192, %s23_s25, [#allocation3], %s2107_s29, %s2107_s29, %s2108_s30  }
   0x6   :  { %s37_s8 = sshll.u32 %s2109_s7, 4  ;;  %s2110_s9 = smov 512   ;;  %s38_s8 = int_to_ptr.vmem [resolvable:$true] %s37_s8 }
   0x7   :  { %s2111_s10 = smov 32  }
   0x8   :  { %43 = dma.hbm_to_vmem [thread:$0]  %s36_s28, 8192, %s38_s8, [#allocation5], %s2110_s9, %s2110_s9, %s2111_s10  }
   0x9   :  { %2102 = dma.done.wait [#allocation3], 8192  }
   0xa   :  { %2103 = vsyncadd [#allocation3], 4294959104 }
   0xb   :  { %2104 = dma.done.wait [#allocation5], 8192  }
   0xc   :  { %2105 = vsyncadd [#allocation5], 4294959104  ;;  %v1857_v0 = vld [vmem:[#allocation2 + $0x38] sm:$0xff]  ;;  %v1856_v4 = vld [vmem:[#allocation2 + $0x30] sm:$0xff] }
   0xd   :  { %v1865_v1 = vld [vmem:[#allocation2 + $0x78] sm:$0xff]  ;;  %594 = vmatpush.bf16.msra.mxu0 %v1857_v0  ;;  %v1864_v5 = vld [vmem:[#allocation2 + $0x70] sm:$0xff]  ;;  %v1855_v8 = vld [vmem:[#allocation2 + $0x28] sm:$0xff] }
   0xe   :  { %v1873_v2 = vld [vmem:[#allocation2 + $0xb8] sm:$0xff]  ;;  %608 = vmatpush.bf16.msra.mxu1 %v1865_v1  ;;  %v1872_v6 = vld [vmem:[#allocation2 + $0xb0] sm:$0xff]  ;;  %v1863_v9 = vld [vmem:[#allocation2 + $0x68] sm:$0xff] }
   0xf   :  { %v1881_v3 = vld [vmem:[#allocation2 + $0xf8] sm:$0xff]  ;;  %622 = vmatpush.bf16.msra.mxu2 %v1873_v2  ;;  %v1880_v7 = vld [vmem:[#allocation2 + $0xf0] sm:$0xff]  ;;  %v1871_v10 = vld [vmem:[#allocation2 + $0xa8] sm:$0xff] }
  0x10   :  { %636 = vmatpush.bf16.msra.mxu3 %v1881_v3  ;;  %v1879_v11 = vld [vmem:[#allocation2 + $0xe8] sm:$0xff]  ;;  %v1854_v12 = vld [vmem:[#allocation2 + $0x20] sm:$0xff]  ;;  %v1853_v16 = vld [vmem:[#allocation2 + $0x18] sm:$0xff] }
  0x11   :  { %595 = vmatpush.bf16.msra.mxu0 %v1856_v4  ;;  %v1862_v13 = vld [vmem:[#allocation2 + $0x60] sm:$0xff]  ;;  %v1861_v17 = vld [vmem:[#allocation2 + $0x58] sm:$0xff]  ;;  %v1852_v20 = vld [vmem:[#allocation2 + $0x10] sm:$0xff] }
  0x12   :  { %609 = vmatpush.bf16.msra.mxu1 %v1864_v5  ;;  %v1870_v14 = vld [vmem:[#allocation2 + $0xa0] sm:$0xff]  ;;  %v1869_v18 = vld [vmem:[#allocation2 + $0x98] sm:$0xff]  ;;  %v1860_v21 = vld [vmem:[#allocation2 + $0x50] sm:$0xff] }
  0x13   :  { %623 = vmatpush.bf16.msra.mxu2 %v1872_v6  ;;  %v1878_v15 = vld [vmem:[#allocation2 + $0xe0] sm:$0xff]  ;;  %v1877_v19 = vld [vmem:[#allocation2 + $0xd8] sm:$0xff]  ;;  %v1868_v22 = vld [vmem:[#allocation2 + $0x90] sm:$0xff] }
  0x14   :  { %637 = vmatpush.bf16.msra.mxu3 %v1880_v7  ;;  %v1876_v23 = vld [vmem:[#allocation2 + $0xd0] sm:$0xff]  ;;  %v1851_v24 = vld [vmem:[#allocation2 + $0x8] sm:$0xff]  ;;  %v1850_v28 = vld [vmem:[#allocation2] sm:$0xff] }
  0x15   :  { %596 = vmatpush.bf16.msra.mxu0 %v1855_v8  ;;  %v1859_v25 = vld [vmem:[#allocation2 + $0x48] sm:$0xff]  ;;  %v1858_v29 = vld [vmem:[#allocation2 + $0x40] sm:$0xff]  ;;  %v1889_v32 = vld [vmem:[#allocation2 + $0x138] sm:$0xff] }
  0x16   :  { %610 = vmatpush.bf16.msra.mxu1 %v1863_v9  ;;  %v1867_v26 = vld [vmem:[#allocation2 + $0x88] sm:$0xff]  ;;  %v1866_v30 = vld [vmem:[#allocation2 + $0x80] sm:$0xff]  ;;  %v1897_v33 = vld [vmem:[#allocation2 + $0x178] sm:$0xff] }
  0x17   :  { %624 = vmatpush.bf16.msra.mxu2 %v1871_v10  ;;  %v1875_v27 = vld [vmem:[#allocation2 + $0xc8] sm:$0xff]  ;;  %v1874_v31 = vld [vmem:[#allocation2 + $0xc0] sm:$0xff]  ;;  %v56_v34 = vld [vmem:[%s2248_s0 + $0x10] sm:$0xff] }
  0x18   :  { %638 = vmatpush.bf16.msra.mxu3 %v1879_v11  ;;  %v64_v35 = vld [vmem:[%s2248_s0 + $0x50] sm:$0xff]  ;;  %v54_v36 = vld [vmem:[%s2248_s0] sm:$0xff]  ;;  %v57_v38 = vld [vmem:[%s2248_s0 + $0x18] sm:$0xff] }
  0x19   :  { %597 = vmatpush.bf16.msra.mxu0 %v1854_v12  ;;  %v62_v37 = vld [vmem:[%s2248_s0 + $0x40] sm:$0xff]  ;;  %v65_v39 = vld [vmem:[%s2248_s0 + $0x58] sm:$0xff]  ;;  %v55_v40 = vld [vmem:[%s2248_s0 + $0x8] sm:$0xff]  ;;  %v72_v44 = vpack.c.bf16 %v64_v35, %v56_v34 }
  0x1a   :  { %611 = vmatpush.bf16.msra.mxu1 %v1862_v13  ;;  %v63_v41 = vld [vmem:[%s2248_s0 + $0x48] sm:$0xff]  ;;  %v1905_v42 = vld [vmem:[#allocation2 + $0x1b8] sm:$0xff]  ;;  %v70_v45 = vpack.c.bf16 %v62_v37, %v54_v36  ;;  %v73_v46 = vpack.c.bf16 %v65_v39, %v57_v38  ;;  %v1888_v48 = vld [vmem:[#allocation2 + $0x130] sm:$0xff] }
  0x1b   :  { %625 = vmatpush.bf16.msra.mxu2 %v1870_v14  ;;  %v1913_v43 = vld [vmem:[#allocation2 + $0x1f8] sm:$0xff]  ;;  %v71_v47 = vpack.c.bf16 %v63_v41, %v55_v40  ;;  %v1896_v49 = vld [vmem:[#allocation2 + $0x170] sm:$0xff]  ;;  %v1887_v52 = vld [vmem:[#allocation2 + $0x128] sm:$0xff] }
  0x1c   :  { %639 = vmatpush.bf16.msra.mxu3 %v1878_v15  ;;  %v1904_v50 = vld [vmem:[#allocation2 + $0x1b0] sm:$0xff]  ;;  %v1895_v53 = vld [vmem:[#allocation2 + $0x168] sm:$0xff]  ;;  %v1886_v56 = vld [vmem:[#allocation2 + $0x120] sm:$0xff] }
  0x1d   :  { %598 = vmatpush.bf16.msra.mxu0 %v1853_v16  ;;  %v1912_v51 = vld [vmem:[#allocation2 + $0x1f0] sm:$0xff]  ;;  %v1903_v54 = vld [vmem:[#allocation2 + $0x1a8] sm:$0xff]  ;;  %v1894_v57 = vld [vmem:[#allocation2 + $0x160] sm:$0xff] }
  0x1e   :  { %612 = vmatpush.bf16.msra.mxu1 %v1861_v17  ;;  %v1911_v55 = vld [vmem:[#allocation2 + $0x1e8] sm:$0xff]  ;;  %v1902_v58 = vld [vmem:[#allocation2 + $0x1a0] sm:$0xff]  ;;  %v1885_v60 = vld [vmem:[#allocation2 + $0x118] sm:$0xff] }
  0x1f   :  { %626 = vmatpush.bf16.msra.mxu2 %v1869_v18  ;;  %v1910_v59 = vld [vmem:[#allocation2 + $0x1e0] sm:$0xff]  ;;  %v1893_v61 = vld [vmem:[#allocation2 + $0x158] sm:$0xff]  ;;  %v1884_v0 = vld [vmem:[#allocation2 + $0x110] sm:$0xff] }
  0x20   :  { %640 = vmatpush.bf16.msra.mxu3 %v1877_v19  ;;  %v1901_v62 = vld [vmem:[#allocation2 + $0x198] sm:$0xff]  ;;  %v1892_v1 = vld [vmem:[#allocation2 + $0x150] sm:$0xff]  ;;  %v1883_v4 = vld [vmem:[#allocation2 + $0x108] sm:$0xff] }
  0x21   :  { %599 = vmatpush.bf16.msra.mxu0 %v1852_v20  ;;  %v1909_v63 = vld [vmem:[#allocation2 + $0x1d8] sm:$0xff]  ;;  %v1900_v2 = vld [vmem:[#allocation2 + $0x190] sm:$0xff]  ;;  %v1891_v5 = vld [vmem:[#allocation2 + $0x148] sm:$0xff] }
  0x22   :  { %613 = vmatpush.bf16.msra.mxu1 %v1860_v21  ;;  %v1908_v3 = vld [vmem:[#allocation2 + $0x1d0] sm:$0xff]  ;;  %v1899_v6 = vld [vmem:[#allocation2 + $0x188] sm:$0xff]  ;;  %v1882_v8 = vld [vmem:[#allocation2 + $0x100] sm:$0xff] }
  0x23   :  { %627 = vmatpush.bf16.msra.mxu2 %v1868_v22  ;;  %v1907_v7 = vld [vmem:[#allocation2 + $0x1c8] sm:$0xff]  ;;  %v1890_v9 = vld [vmem:[#allocation2 + $0x140] sm:$0xff]  ;;  %v60_v16 = vld [vmem:[%s2248_s0 + $0x30] sm:$0xff] }
  0x24   :  { %641 = vmatpush.bf16.msra.mxu3 %v1876_v23  ;;  %v1898_v10 = vld [vmem:[#allocation2 + $0x180] sm:$0xff]  ;;  %v59_v14 = vld [vmem:[%s2248_s0 + $0x28] sm:$0xff]  ;;  %v68_v17 = vld [vmem:[%s2248_s0 + $0x70] sm:$0xff] }
  0x25   :  { %600 = vmatpush.bf16.msra.mxu0 %v1851_v24  ;;  %v1906_v11 = vld [vmem:[#allocation2 + $0x1c0] sm:$0xff]  ;;  %v67_v15 = vld [vmem:[%s2248_s0 + $0x68] sm:$0xff]  ;;  %v61_v18 = vld [vmem:[%s2248_s0 + $0x38] sm:$0xff]  ;;  %v76_v22 = vpack.c.bf16 %v68_v17, %v60_v16 }
  0x26   :  { %614 = vmatpush.bf16.msra.mxu1 %v1859_v25  ;;  %v58_v12 = vld [vmem:[%s2248_s0 + $0x20] sm:$0xff]  ;;  %v69_v19 = vld [vmem:[%s2248_s0 + $0x78] sm:$0xff]  ;;  %v75_v21 = vpack.c.bf16 %v67_v15, %v59_v14  ;;  %v1830_v34 = vld [vmem:[#allocation4 + $0x1e8] sm:$0xf0] }
  0x27   :  { %628 = vmatpush.bf16.msra.mxu2 %v1867_v26  ;;  %v66_v13 = vld [vmem:[%s2248_s0 + $0x60] sm:$0xff]  ;;  %v77_v23 = vpack.c.bf16 %v69_v19, %v61_v18  ;;  %v1943_v14 = vld [vmem:[#allocation4 + $0xe4] sm:$0xf0]  ;;  %v1939_v15 = vld [vmem:[#allocation4 + $0xcc] sm:$0xf] }
  0x28   :  { %642 = vmatpush.bf16.msra.mxu3 %v1875_v27  ;;  %v74_v20 = vpack.c.bf16 %v66_v13, %v58_v12  ;;  %v1820_v24 = vld [vmem:[#allocation4 + $0x1c0] sm:$0xf]  ;;  %v1970_v26 = vld [vmem:[#allocation4 + $0x1c4] sm:$0xf]  ;;  %v1700_v12 = vld [vmem:[#allocation4 + $0xc8] sm:$0xf] }
  0x29   :  { %601 = vmatpush.bf16.msra.mxu0 %v1850_v28  ;;  %v1974_v25 = vld [vmem:[#allocation4 + $0x1dc] sm:$0xf0]  ;;  %v1822_v28 = vld [vmem:[#allocation4 + $0x1e0] sm:$0xf0]  ;;  %v1702_v16 = vld [vmem:[#allocation4 + $0xe8] sm:$0xf0]  ;;  %v1701_v18 = vor.u32 %v1943_v14, %v1700_v12 }
  0x2a   :  { %615 = vmatpush.bf16.msra.mxu1 %v1858_v29  ;;  %v1821_v27 = vor.u32 %v1974_v25, %v1820_v24  ;;  %v1828_v29 = vld [vmem:[#allocation4 + $0x1c8] sm:$0xf]  ;;  %v1788_v35 = vld [vmem:[#allocation4 + $0x180] sm:$0xf]  ;;  %v1962_v38 = vld [vmem:[#allocation4 + $0x184] sm:$0xf]  ;;  %v1705_v19 = vor.u32 %v1939_v15, %v1702_v16 }
  0x2b   :  { %629 = vmatpush.bf16.msra.mxu2 %v1866_v30  ;;  %v1975_v30 = vld [vmem:[#allocation4 + $0x1e4] sm:$0xf0]  ;;  %v1966_v37 = vld [vmem:[#allocation4 + $0x19c] sm:$0xf0]  ;;  %v1790_v39 = vld [vmem:[#allocation4 + $0x1a0] sm:$0xf0] }
  0x2c   :  { %643 = vmatpush.bf16.msra.mxu3 %v1874_v31  ;;  %602 = vmatmul.bf16.vlgmr.msra.gmra.mxu0 %v70_v45  ;;  %v1825_v31 = vor.u32 %v1970_v26, %v1822_v28  ;;  %v1789_v40 = vor.u32 %v1966_v37, %v1788_v35  ;;  %v1793_v41 = vor.u32 %v1962_v38, %v1790_v39  ;;  %v1662_v24 = vld [vmem:[#allocation4 + $0xa0] sm:$0xf0]  ;;  %v1668_v25 = vld [vmem:[#allocation4 + $0x88] sm:$0xf]  ;;  %v1965_v14 = vld [vmem:[#allocation4 + $0x19c] sm:$0xf] }
  0x2d   :  { %650 = vmatpush.bf16.msrb.mxu0 %v1889_v32  ;;  %616 = vmatmul.bf16.vlgmr.msra.gmra.mxu1 %v71_v47  ;;  %v1829_v32 = vor.u32 %v1975_v30, %v1828_v29  ;;  %v1935_v26 = vld [vmem:[#allocation4 + $0xa4] sm:$0xf0]  ;;  %v1931_v29 = vld [vmem:[#allocation4 + $0x8c] sm:$0xf]  ;;  %v1814_v15 = vld [vmem:[#allocation4 + $0x1b8] sm:$0xf0] }
  0x2e   :  { %664 = vmatpush.bf16.msrb.mxu1 %v1897_v33  ;;  %630 = vmatmul.bf16.vlgmr.msra.gmra.mxu2 %v72_v44  ;;  %v1971_v33 = vld [vmem:[#allocation4 + $0x1cc] sm:$0xf]  ;;  %v1669_v28 = vor.u32 %v1935_v26, %v1668_v25  ;;  %v1636_v37 = vld [vmem:[#allocation4 + $0x48] sm:$0xf]  ;;  %v1961_v25 = vld [vmem:[#allocation4 + $0x174] sm:$0xf0] }
  0x2f   :  { %678 = vmatpush.bf16.msrb.mxu2 %v1905_v42  ;;  %644 = vmatmul.bf16.vlgmr.msra.gmra.mxu3 %v73_v46  ;;  %v1833_v36 = vor.u32 %v1971_v33, %v1830_v34  ;;  %v1796_v42 = vld [vmem:[#allocation4 + $0x188] sm:$0xf]  ;;  %v1963_v44 = vld [vmem:[#allocation4 + $0x18c] sm:$0xf]  ;;  %v1926_v33 = vld [vmem:[#allocation4 + $0x5c] sm:$0xf0] }
  0x30   :  { %692 = vmatpush.bf16.msrb.mxu3 %v1913_v43  ;;  %v1967_v43 = vld [vmem:[#allocation4 + $0x1a4] sm:$0xf0]  ;;  %v1798_v46 = vld [vmem:[#allocation4 + $0x1a8] sm:$0xf0]  ;;  %v1922_v34 = vld [vmem:[#allocation4 + $0x44] sm:$0xf] }
  0x31   :  { %651 = vmatpush.bf16.msrb.mxu0 %v1888_v48  ;;  %v1797_v45 = vor.u32 %v1967_v43, %v1796_v42  ;;  %v1801_v47 = vor.u32 %v1963_v44, %v1798_v46  ;;  %v1756_v48 = vld [vmem:[#allocation4 + $0x140] sm:$0xf]  ;;  %v1670_v30 = vld [vmem:[#allocation4 + $0xa8] sm:$0xf0]  ;;  %v1927_v38 = vld [vmem:[#allocation4 + $0x64] sm:$0xf0] }
  0x32   :  { %665 = vmatpush.bf16.msrb.mxu1 %v1896_v49  ;;  %v1958_v49 = vld [vmem:[#allocation4 + $0x15c] sm:$0xf0]  ;;  %v1638_v42 = vld [vmem:[#allocation4 + $0x68] sm:$0xf0]  ;;  %v1914_v46 = vld [vmem:[#allocation4 + $0x4] sm:$0xf] }
  0x33   :  { %679 = vmatpush.bf16.msrb.mxu2 %v1904_v50  ;;  %v1954_v50 = vld [vmem:[#allocation4 + $0x144] sm:$0xf]  ;;  %v1596_v44 = vld [vmem:[#allocation4] sm:$0xf] }
  0x34   :  { %693 = vmatpush.bf16.msrb.mxu3 %v1912_v51  ;;  %v1757_v51 = vor.u32 %v1958_v49, %v1756_v48  ;;  %v1598_v48 = vld [vmem:[#allocation4 + $0x20] sm:$0xf0]  ;;  %v1604_v49 = vld [vmem:[#allocation4 + $0x8] sm:$0xf] }
  0x35   :  { %652 = vmatpush.bf16.msrb.mxu0 %v1887_v52  ;;  %v1758_v52 = vld [vmem:[#allocation4 + $0x160] sm:$0xf0] }
  0x36   :  { %666 = vmatpush.bf16.msrb.mxu1 %v1895_v53  ;;  %v1764_v53 = vld [vmem:[#allocation4 + $0x148] sm:$0xf] }
  0x37   :  { %680 = vmatpush.bf16.msrb.mxu2 %v1903_v54  ;;  %v1959_v54 = vld [vmem:[#allocation4 + $0x164] sm:$0xf0] }
  0x38   :  { %694 = vmatpush.bf16.msrb.mxu3 %v1911_v55  ;;  %v1761_v55 = vor.u32 %v1954_v50, %v1758_v52  ;;  %v1919_v50 = vld [vmem:[#allocation4 + $0x24] sm:$0xf0] }
  0x39   :  { %653 = vmatpush.bf16.msrb.mxu0 %v1886_v56  ;;  %v1765_v56 = vor.u32 %v1959_v54, %v1764_v53  ;;  %v1605_v52 = vor.u32 %v1919_v50, %v1604_v49  ;;  %v1915_v53 = vld [vmem:[#allocation4 + $0xc] sm:$0xf]  ;;  %v1708_v49 = vld [vmem:[#allocation4 + $0xd0] sm:$0xf] }
  0x3a   :  { %667 = vmatpush.bf16.msrb.mxu1 %v1894_v57  ;;  %v1955_v57 = vld [vmem:[#allocation4 + $0x14c] sm:$0xf]  ;;  %v1944_v50 = vld [vmem:[#allocation4 + $0xec] sm:$0xf0] }
  0x3b   :  { %681 = vmatpush.bf16.msrb.mxu2 %v1902_v58  ;;  %v1766_v58 = vld [vmem:[#allocation4 + $0x168] sm:$0xf0] }
  0x3c   :  { %695 = vmatpush.bf16.msrb.mxu3 %v1910_v59  ;;  %v1724_v59 = vld [vmem:[#allocation4 + $0x100] sm:$0xf]  ;;  %v1606_v54 = vld [vmem:[#allocation4 + $0x28] sm:$0xf0] }
  0x3d   :  { %654 = vmatpush.bf16.msrb.mxu0 %v1885_v60  ;;  %v1769_v60 = vor.u32 %v1955_v57, %v1766_v58  ;;  %v1976_v57 = vld [vmem:[#allocation4 + $0x1ec] sm:$0xf0]  ;;  %v1972_v58 = vld [vmem:[#allocation4 + $0x1d4] sm:$0xf] }
  0x3e   :  { %668 = vmatpush.bf16.msrb.mxu1 %v1893_v61  ;;  %v1950_v61 = vld [vmem:[#allocation4 + $0x11c] sm:$0xf0] }
  0x3f   :  { %682 = vmatpush.bf16.msrb.mxu2 %v1901_v62  ;;  %v1946_v62 = vld [vmem:[#allocation4 + $0x104] sm:$0xf] }
  0x40   :  { %696 = vmatpush.bf16.msrb.mxu3 %v1909_v63  ;;  %v1726_v63 = vld [vmem:[#allocation4 + $0x120] sm:$0xf0] }
  0x41   :  { %655 = vmatpush.bf16.msrb.mxu0 %v1884_v0  ;;  %v1725_v0 = vor.u32 %v1950_v61, %v1724_v59  ;;  %v1838_v59 = vld [vmem:[#allocation4 + $0x1f0] sm:$0xf0] }
  0x42   :  { %669 = vmatpush.bf16.msrb.mxu1 %v1892_v1  ;;  %v1729_v1 = vor.u32 %v1946_v62, %v1726_v63  ;;  %v1841_v61 = vor.u32 %v1972_v58, %v1838_v59  ;;  %v1844_v62 = vld [vmem:[#allocation4 + $0x1d8] sm:$0xf] }
  0x43   :  { %683 = vmatpush.bf16.msrb.mxu2 %v1900_v2  ;;  %v1732_v2 = vld [vmem:[#allocation4 + $0x108] sm:$0xf]  ;;  %v1977_v63 = vld [vmem:[#allocation4 + $0x1f4] sm:$0xf0] }
  0x44   :  { %697 = vmatpush.bf16.msrb.mxu3 %v1908_v3  ;;  %v1951_v3 = vld [vmem:[#allocation4 + $0x124] sm:$0xf0] }
  0x45   :  { %656 = vmatpush.bf16.msrb.mxu0 %v1883_v4  ;;  %v1947_v4 = vld [vmem:[#allocation4 + $0x10c] sm:$0xf] }
  0x46   :  { %670 = vmatpush.bf16.msrb.mxu1 %v1891_v5  ;;  %v1733_v5 = vor.u32 %v1951_v3, %v1732_v2  ;;  %v1845_v3 = vor.u32 %v1977_v63, %v1844_v62  ;;  %v1676_v62 = vld [vmem:[#allocation4 + $0x90] sm:$0xf] }
  0x47   :  { %684 = vmatpush.bf16.msrb.mxu2 %v1899_v6  ;;  %v1734_v6 = vld [vmem:[#allocation4 + $0x128] sm:$0xf0] }
  0x48   :  { %698 = vmatpush.bf16.msrb.mxu3 %v1907_v7  ;;  %v1692_v7 = vld [vmem:[#allocation4 + $0xc0] sm:$0xf] }
  0x49   :  { %657 = vmatpush.bf16.msrb.mxu0 %v1882_v8  ;;  %v1942_v8 = vld [vmem:[#allocation4 + $0xdc] sm:$0xf0] }
  0x4a   :  { %671 = vmatpush.bf16.msrb.mxu1 %v1890_v9  ;;  %v1737_v9 = vor.u32 %v1947_v4, %v1734_v6  ;;  %v1693_v13 = vor.u32 %v1942_v8, %v1692_v7  ;;  %v1846_v4 = vld [vmem:[#allocation4 + $0x1f8] sm:$0xf0]  ;;  %v1968_v6 = vld [vmem:[#allocation4 + $0x1ac] sm:$0xf0] }
  0x4b   :  { %685 = vmatpush.bf16.msrb.mxu2 %v1898_v10  ;;  %v1938_v10 = vld [vmem:[#allocation4 + $0xc4] sm:$0xf] }
  0x4c   :  { %699 = vmatpush.bf16.msrb.mxu3 %v1906_v11  ;;  %658 = vmatmul.bf16.vlgmr.msrb.gmra.mxu0 %v74_v20  ;;  %v1694_v11 = vld [vmem:[#allocation4 + $0xe0] sm:$0xf0]  ;;  %v1660_v20 = vld [vmem:[#allocation4 + $0x80] sm:$0xf] }
  0x4d   :  { %672 = vmatmul.bf16.vlgmr.msrb.gmra.mxu1 %v75_v21  ;;  %1120 = vmatpush.bf16.msra.mxu0 %v1821_v27  ;;  %v1697_v17 = vor.u32 %v1938_v10, %v1694_v11  ;;  %v1934_v21 = vld [vmem:[#allocation4 + $0x9c] sm:$0xf0]  ;;  %v1806_v10 = vld [vmem:[#allocation4 + $0x1b0] sm:$0xf0]  ;;  %v1812_v11 = vld [vmem:[#allocation4 + $0x198] sm:$0xf] }
  0x4e   :  { %686 = vmatmul.bf16.vlgmr.msrb.gmra.mxu2 %v76_v22  ;;  %1134 = vmatpush.bf16.msra.mxu1 %v1825_v31  ;;  %v1930_v22 = vld [vmem:[#allocation4 + $0x84] sm:$0xf]  ;;  %v1673_v31 = vor.u32 %v1931_v29, %v1670_v30  ;;  %v1957_v29 = vld [vmem:[#allocation4 + $0x15c] sm:$0xf] }
  0x4f   :  { %700 = vmatmul.bf16.vlgmr.msrb.gmra.mxu3 %v77_v23  ;;  %1148 = vmatpush.bf16.msra.mxu2 %v1829_v32  ;;  %v1661_v23 = vor.u32 %v1934_v21, %v1660_v20  ;;  %v1665_v27 = vor.u32 %v1930_v22, %v1662_v24  ;;  %v1628_v32 = vld [vmem:[#allocation4 + $0x40] sm:$0xf]  ;;  %v1960_v20 = vld [vmem:[#allocation4 + $0x16c] sm:$0xf0]  ;;  %v1956_v21 = vld [vmem:[#allocation4 + $0x154] sm:$0xf] }
  0x50   :  { %1162 = vmatpush.bf16.msra.mxu3 %v1833_v36  ;;  %v1629_v35 = vor.u32 %v1926_v33, %v1628_v32  ;;  %v1630_v36 = vld [vmem:[#allocation4 + $0x60] sm:$0xf0]  ;;  %v1780_v24 = vld [vmem:[#allocation4 + $0x158] sm:$0xf]  ;;  %v1782_v30 = vld [vmem:[#allocation4 + $0x178] sm:$0xf0] }
  0x51   :  { %1121 = vmatpush.bf16.msra.mxu0 %v1789_v40  ;;  %v1633_v39 = vor.u32 %v1922_v34, %v1630_v36  ;;  %v1637_v40 = vor.u32 %v1927_v38, %v1636_v37  ;;  %v1785_v33 = vor.u32 %v1957_v29, %v1782_v30  ;;  %v1740_v34 = vld [vmem:[#allocation4 + $0x110] sm:$0xf]  ;;  %v1948_v36 = vld [vmem:[#allocation4 + $0x114] sm:$0xf] }
  0x52   :  { %1135 = vmatpush.bf16.msra.mxu1 %v1793_v41  ;;  %v1923_v41 = vld [vmem:[#allocation4 + $0x4c] sm:$0xf]  ;;  %v1742_v38 = vld [vmem:[#allocation4 + $0x130] sm:$0xf0] }
  0x53   :  { %1149 = vmatpush.bf16.msra.mxu2 %v1797_v45  ;;  %v1641_v43 = vor.u32 %v1923_v41, %v1638_v42  ;;  %v1918_v45 = vld [vmem:[#allocation4 + $0x1c] sm:$0xf0] }
  0x54   :  { %1163 = vmatpush.bf16.msra.mxu3 %v1801_v47  ;;  %v1597_v47 = vor.u32 %v1918_v45, %v1596_v44  ;;  %v1949_v45 = vld [vmem:[#allocation4 + $0x11c] sm:$0xf] }
  0x55   :  { %1122 = vmatpush.bf16.msra.mxu0 %v1757_v51  ;;  %v1601_v51 = vor.u32 %v1914_v46, %v1598_v48  ;;  %v1750_v46 = vld [vmem:[#allocation4 + $0x138] sm:$0xf0] }
  0x56   :  { %1136 = vmatpush.bf16.msra.mxu1 %v1761_v55  ;;  %v1836_v55 = vld [vmem:[#allocation4 + $0x1d0] sm:$0xf] }
  0x57   :  { %1150 = vmatpush.bf16.msra.mxu2 %v1765_v56  ;;  %v1609_v56 = vor.u32 %v1915_v53, %v1606_v54  ;;  %v1709_v54 = vor.u32 %v1944_v50, %v1708_v49 }
  0x58   :  { %1164 = vmatpush.bf16.msra.mxu3 %v1769_v60  ;;  %v1837_v60 = vor.u32 %v1976_v57, %v1836_v55  ;;  %v1710_v55 = vld [vmem:[#allocation4 + $0xf0] sm:$0xf0]  ;;  %v1945_v57 = vld [vmem:[#allocation4 + $0xf4] sm:$0xf0] }
  0x59   :  { %1123 = vmatpush.bf16.msra.mxu0 %v1725_v0  ;;  %v1973_v0 = vld [vmem:[#allocation4 + $0x1dc] sm:$0xf] }
  0x5a   :  { %1137 = vmatpush.bf16.msra.mxu1 %v1729_v1  ;;  %v2204_v1 = vld [vmem:[%s2250_s2] ss:$0 sm:$0xff]  ;;  %v1849_v7 = vor.u32 %v1973_v0, %v1846_v4  ;;  %v1936_v0 = vld [vmem:[#allocation4 + $0xac] sm:$0xf0] }
  0x5b   :  { %1151 = vmatpush.bf16.msra.mxu2 %v1733_v5  ;;  %v1804_v5 = vld [vmem:[#allocation4 + $0x190] sm:$0xf] }
  0x5c   :  { %1165 = vmatpush.bf16.msra.mxu3 %v1737_v9  ;;  %v1805_v8 = vor.u32 %v1968_v6, %v1804_v5  ;;  %v1964_v9 = vld [vmem:[#allocation4 + $0x194] sm:$0xf] }
  0x5d   :  { %1124 = vmatpush.bf16.msra.mxu0 %v1693_v13  ;;  %v1809_v12 = vor.u32 %v1964_v9, %v1806_v10  ;;  %v1969_v13 = vld [vmem:[#allocation4 + $0x1b4] sm:$0xf0]  ;;  %v1933_v9 = vld [vmem:[#allocation4 + $0x9c] sm:$0xf] }
  0x5e   :  { %1138 = vmatpush.bf16.msra.mxu1 %v1697_v17  ;;  %v1813_v17 = vor.u32 %v1969_v13, %v1812_v11 }
  0x5f   :  { %1152 = vmatpush.bf16.msra.mxu2 %v1701_v18  ;;  %v1817_v18 = vor.u32 %v1965_v14, %v1814_v15  ;;  %v1686_v14 = vld [vmem:[#allocation4 + $0xb8] sm:$0xf0]  ;;  %v1644_v15 = vld [vmem:[#allocation4 + $0x50] sm:$0xf] }
  0x60   :  { %1166 = vmatpush.bf16.msra.mxu3 %v1705_v19  ;;  %v1772_v19 = vld [vmem:[#allocation4 + $0x150] sm:$0xf] }
  0x61   :  { %1125 = vmatpush.bf16.msra.mxu0 %v1661_v23  ;;  %v1773_v22 = vor.u32 %v1960_v20, %v1772_v19  ;;  %v1774_v23 = vld [vmem:[#allocation4 + $0x170] sm:$0xf0]  ;;  %v1652_v20 = vld [vmem:[#allocation4 + $0x58] sm:$0xf] }
  0x62   :  { %1139 = vmatpush.bf16.msra.mxu1 %v1665_v27  ;;  %v1777_v27 = vor.u32 %v1956_v21, %v1774_v23  ;;  %v1646_v19 = vld [vmem:[#allocation4 + $0x70] sm:$0xf0]  ;;  %v1925_v23 = vld [vmem:[#allocation4 + $0x5c] sm:$0xf] }
  0x63   :  { %1153 = vmatpush.bf16.msra.mxu2 %v1669_v28  ;;  %v1781_v28 = vor.u32 %v1961_v25, %v1780_v24  ;;  %v1654_v24 = vld [vmem:[#allocation4 + $0x78] sm:$0xf0] }
  0x64   :  { %1167 = vmatpush.bf16.msra.mxu3 %v1673_v31 }
  0x65   :  { %1126 = vmatpush.bf16.msra.mxu0 %v1629_v35  ;;  %v1952_v35 = vld [vmem:[#allocation4 + $0x12c] sm:$0xf0] }
  0x66   :  { %1140 = vmatpush.bf16.msra.mxu1 %v1633_v39  ;;  %v1741_v37 = vor.u32 %v1952_v35, %v1740_v34  ;;  %v1748_v39 = vld [vmem:[#allocation4 + $0x118] sm:$0xf]  ;;  %v1657_v34 = vor.u32 %v1925_v23, %v1654_v24 }
  0x67   :  { %1154 = vmatpush.bf16.msra.mxu2 %v1637_v40  ;;  %v1953_v40 = vld [vmem:[#allocation4 + $0x134] sm:$0xf0] }
  0x68   :  { %1168 = vmatpush.bf16.msra.mxu3 %v1641_v43  ;;  %v1745_v43 = vor.u32 %v1948_v36, %v1742_v38  ;;  %v1749_v44 = vor.u32 %v1953_v40, %v1748_v39  ;;  %v1620_v35 = vld [vmem:[#allocation4 + $0x18] sm:$0xf]  ;;  %v1917_v38 = vld [vmem:[#allocation4 + $0x1c] sm:$0xf] }
  0x69   :  { %1127 = vmatpush.bf16.msra.mxu0 %v1597_v47  ;;  %v1753_v47 = vor.u32 %v1949_v45, %v1750_v46  ;;  %v1921_v36 = vld [vmem:[#allocation4 + $0x34] sm:$0xf0]  ;;  %v1622_v39 = vld [vmem:[#allocation4 + $0x38] sm:$0xf0] }
  0x6a   :  { %1141 = vmatpush.bf16.msra.mxu1 %v1601_v51  ;;  %v1940_v51 = vld [vmem:[#allocation4 + $0xd4] sm:$0xf] }
  0x6b   :  { %1155 = vmatpush.bf16.msra.mxu2 %v1605_v52  ;;  %v1713_v58 = vor.u32 %v1940_v51, %v1710_v55 }
  0x6c   :  { %1169 = vmatpush.bf16.msra.mxu3 %v1609_v56  ;;  %v1716_v56 = vld [vmem:[#allocation4 + $0xd8] sm:$0xf] }
  0x6d   :  { %1176 = vmatpush.bf16.msrb.mxu0 %v1837_v60  ;;  %v1717_v59 = vor.u32 %v1945_v57, %v1716_v56  ;;  %v1941_v60 = vld [vmem:[#allocation4 + $0xdc] sm:$0xf] }
  0x6e   :  { %1190 = vmatpush.bf16.msrb.mxu1 %v1841_v61  ;;  %v1718_v61 = vld [vmem:[#allocation4 + $0xf8] sm:$0xf0] }
  0x6f   :  { %1204 = vmatpush.bf16.msrb.mxu2 %v1845_v3  ;;  %v1721_v63 = vor.u32 %v1941_v60, %v1718_v61  ;;  %v1678_v3 = vld [vmem:[#allocation4 + $0xb0] sm:$0xf0] }
  0x70   :  { %1218 = vmatpush.bf16.msrb.mxu3 %v1849_v7  ;;  %v1684_v7 = vld [vmem:[#allocation4 + $0x98] sm:$0xf] }
  0x71   :  { %1177 = vmatpush.bf16.msrb.mxu0 %v1805_v8  ;;  %v1937_v8 = vld [vmem:[#allocation4 + $0xb4] sm:$0xf0] }
  0x72   :  { %1191 = vmatpush.bf16.msrb.mxu1 %v1809_v12  ;;  %v1685_v13 = vor.u32 %v1937_v8, %v1684_v7 }
  0x73   :  { %1205 = vmatpush.bf16.msrb.mxu2 %v1813_v17  ;;  %v1689_v17 = vor.u32 %v1933_v9, %v1686_v14 }
  0x74   :  { %1219 = vmatpush.bf16.msrb.mxu3 %v1817_v18  ;;  %v1924_v18 = vld [vmem:[#allocation4 + $0x54] sm:$0xf] }
  0x75   :  { %1178 = vmatpush.bf16.msrb.mxu0 %v1773_v22  ;;  %v1929_v22 = vld [vmem:[#allocation4 + $0x74] sm:$0xf0] }
  0x76   :  { %1192 = vmatpush.bf16.msrb.mxu1 %v1777_v27  ;;  %v1649_v27 = vor.u32 %v1924_v18, %v1646_v19  ;;  %v1653_v30 = vor.u32 %v1929_v22, %v1652_v20 }
  0x77   :  { %1206 = vmatpush.bf16.msrb.mxu2 %v1781_v28  ;;  %v1612_v28 = vld [vmem:[#allocation4 + $0x10] sm:$0xf] }
  0x78   :  { %1220 = vmatpush.bf16.msrb.mxu3 %v1785_v33  ;;  %v1614_v33 = vld [vmem:[#allocation4 + $0x30] sm:$0xf0] }
  0x79   :  { %1179 = vmatpush.bf16.msrb.mxu0 %v1741_v37 }
  0x7a   :  { %1193 = vmatpush.bf16.msrb.mxu1 %v1745_v43 }
  0x7b   :  { %1207 = vmatpush.bf16.msrb.mxu2 %v1749_v44 }
  0x7c   :  { %1221 = vmatpush.bf16.msrb.mxu3 %v1753_v47  ;;  %v1621_v47 = vor.u32 %v1921_v36, %v1620_v35 }
  0x7d   :  { %1180 = vmatpush.bf16.msrb.mxu0 %v1709_v54 }
  0x7e   :  { %1194 = vmatpush.bf16.msrb.mxu1 %v1713_v58 }
  0x7f   :  { %1208 = vmatpush.bf16.msrb.mxu2 %v1717_v59 }
  0x80   :  { %1222 = vmatpush.bf16.msrb.mxu3 %v1721_v63 }
  0x83   :  { %1209 = vmatpush.bf16.msrb.mxu2 %v1685_v13 }
  0x84   :  { %1223 = vmatpush.bf16.msrb.mxu3 %v1689_v17 }
  0x87   :  { %1210 = vmatpush.bf16.msrb.mxu2 %v1653_v30 }
  0x88   :  { %1224 = vmatpush.bf16.msrb.mxu3 %v1657_v34 }
  0x8b   :  { %1211 = vmatpush.bf16.msrb.mxu2 %v1621_v47 }
  0xa9   :  { %v603_v2 = vpop.f32.mrf.mxu0 }
  0xaa   :  { %v617_v16 = vpop.f32.mrf.mxu1  ;;  %v604_v26 = vadd.f32 %v2204_v1, %v603_v2  ;;  %v1932_v2 = vld [vmem:[#allocation4 + $0x94] sm:$0xf] }
  0xab   :  { %v1681_v6 = vor.u32 %v1932_v2, %v1678_v3  ;;  %v2214_v2 = vld [vmem:[%s2252_s4] sm:$0xff] }
  0xac   :  { %v618_v41 = vadd.f32 %v617_v16, %v604_v26  ;;  %v1928_v16 = vld [vmem:[#allocation4 + $0x6c] sm:$0xf0]  ;;  %v778_v3 = vperm.slane %v2214_v2, 0  ;;  %v783_v30 = vperm.slane %v2214_v2, 5 }
  0xad   :  { %1195 = vmatpush.bf16.msrb.mxu1 %v1681_v6  ;;  %v1645_v26 = vor.u32 %v1928_v16, %v1644_v15 }
  0xb1   :  { %v631_v31 = vpop.f32.mrf.mxu2  ;;  %v605_v42 = vpop.f32.mrf.mxu0  ;;  %1196 = vmatpush.bf16.msrb.mxu1 %v1649_v27 }
  0xb2   :  { %v645_v32 = vpop.f32.mrf.mxu3  ;;  %v619_v48 = vpop.f32.mrf.mxu1  ;;  %v632_v52 = vadd.f32 %v631_v31, %v618_v41  ;;  %v606_v53 = vadd.f32 %v2204_v1, %v605_v42  ;;  %v1677_v1 = vor.u32 %v1936_v0, %v1676_v62  ;;  %v1920_v31 = vld [vmem:[#allocation4 + $0x2c] sm:$0xf0] }
  0xb3   :  { %v1613_v42 = vor.u32 %v1920_v31, %v1612_v28 }
  0xb4   :  { %v646_v10 = vadd.f32 %v645_v32, %v632_v52  ;;  %v620_v11 = vadd.f32 %v619_v48, %v606_v53  ;;  %1181 = vmatpush.bf16.msrb.mxu0 %v1677_v1  ;;  %v1916_v32 = vld [vmem:[#allocation4 + $0x14] sm:$0xf]  ;;  %v1625_v48 = vor.u32 %v1917_v38, %v1622_v39 }
  0xb5   :  { %v1617_v43 = vor.u32 %v1916_v32, %v1614_v33 }
  0xb6   :  { %1225 = vmatpush.bf16.msrb.mxu3 %v1625_v48 }
  0xb7   :  { %1197 = vmatpush.bf16.msrb.mxu1 %v1617_v43 }
  0xb8   :  { %1182 = vmatpush.bf16.msrb.mxu0 %v1645_v26 }
  0xb9   :  { %v633_v4 = vpop.f32.mrf.mxu2 }
  0xba   :  { %v647_v5 = vpop.f32.mrf.mxu3  ;;  %v634_v29 = vadd.f32 %v633_v4, %v620_v11  ;;  %v779_v4 = vperm.slane %v2214_v2, 1  ;;  %v781_v11 = vperm.slane %v2214_v2, 3 }
  0xbc   :  { %v648_v44 = vadd.f32 %v647_v5, %v634_v29  ;;  %1183 = vmatpush.bf16.msrb.mxu0 %v1613_v42  ;;  %v782_v29 = vperm.slane %v2214_v2, 4 }
  0xc9   :  { %v659_v12 = vpop.f32.mrf.mxu0 }
  0xca   :  { %v660_v21 = vadd.f32 %v659_v12, %v646_v10  ;;  %v673_v25 = vpop.f32.mrf.mxu1  ;;  %v780_v10 = vperm.slane %v2214_v2, 2 }
  0xcc   :  { %v674_v37 = vadd.f32 %v673_v25, %v660_v21 }
  0xd1   :  { %v687_v40 = vpop.f32.mrf.mxu2  ;;  %v661_v46 = vpop.f32.mrf.mxu0 }
  0xd2   :  { %v701_v41 = vpop.f32.mrf.mxu3  ;;  %v688_v45 = vadd.f32 %v687_v40, %v674_v37  ;;  %v662_v49 = vadd.f32 %v661_v46, %v648_v44  ;;  %v675_v51 = vpop.f32.mrf.mxu1 }
  0xd4   :  { %v702_v50 = vadd.f32 %v701_v41, %v688_v45  ;;  %v676_v52 = vadd.f32 %v675_v51, %v662_v49  ;;  %v785_v51 = vperm.slane %v2214_v2, 7 }
  0xd6   :  { %v706_v54 = vmax.f32 %v702_v50, 0.0  ;;  %v784_v50 = vperm.slane %v2214_v2, 6 }
  0xd8   :  { %v708_v58 = vpack.c.bf16 %v706_v54, %v706_v54 }
  0xd9   :  { %v689_v53 = vpop.f32.mrf.mxu2 }
  0xda   :  { %v690_v55 = vadd.f32 %v689_v53, %v676_v52  ;;  %v703_v56 = vpop.f32.mrf.mxu3  ;;  %v796_v62 = vunpack.c.l.b16 %v708_v58 }
  0xdc   :  { %v704_v57 = vadd.f32 %v703_v56, %v690_v55 }
  0xde   :  { %v707_v59 = vmax.f32 %v704_v57, 0.0 }
  0xe0   :  { %v709_v60 = vpack.c.bf16 %v707_v59, %v707_v59  ;;  %v1981_v61 = vpack.c.bf16 %v707_v59, %v706_v54 }
  0xe2   :  { %1982 = vst [vmem:[%s2254_s6] sm:$0xff] %v1981_v61   ;;  %v797_v63 = vunpack.c.l.b16 %v709_v60 }
  0xe4   :  { %v798_v0 = vpack.c.b16 %v797_v63, %v796_v62 }
  0xe6   :  { %1128 = vmatmul.bf16.vlgmr.msra.gmra.mxu0 %v798_v0  ;;  %1142 = vmatmul.bf16.vlgmr.msra.gmra.mxu1 %v798_v0 }
  0xe7   :  { %1156 = vmatmul.bf16.vlgmr.msra.gmra.mxu2 %v798_v0  ;;  %1170 = vmatmul.bf16.vlgmr.msra.gmra.mxu3 %v798_v0 }
  0xf6   :  { %1184 = vmatmul.bf16.vlgmr.msrb.gmra.mxu0 %v798_v0  ;;  %1198 = vmatmul.bf16.vlgmr.msrb.gmra.mxu1 %v798_v0 }
  0xf7   :  { %1212 = vmatmul.bf16.vlgmr.msrb.gmra.mxu2 %v798_v0  ;;  %1226 = vmatmul.bf16.vlgmr.msrb.gmra.mxu3 %v798_v0 }
 0x163   :  { %v1129_v5 = vpop.f32.mrf.mxu0  ;;  %v1143_v1 = vpop.f32.mrf.mxu1 }
 0x164   :  { %v1130_v6 = vadd.f32 %v1129_v5, %v778_v3  ;;  %v1144_v7 = vadd.f32 %v1143_v1, %v779_v4 }
 0x166   :  { %v1232_v8 = vsub.f32 0.0, %v1130_v6  ;;  %v1233_v9 = vsub.f32 0.0, %v1144_v7 }
 0x168   :  { %v1248_v12 = vmul.f32 1.442695, %v1232_v8  ;;  %v1250_v13 = vmul.f32 1.442695, %v1233_v9 }
 0x16a   :  { %1990 = vpow2.f32 %v1248_v12  ;;  %v1157_v14 = vpop.f32.mrf.mxu2  ;;  %v1171_v15 = vpop.f32.mrf.mxu3 }
 0x16b   :  { %1992 = vpow2.f32 %v1250_v13  ;;  %v1158_v16 = vadd.f32 %v1157_v14, %v780_v10  ;;  %v1172_v17 = vadd.f32 %v1171_v15, %v781_v11  ;;  %v1131_v18 = vpop.f32.mrf.mxu0  ;;  %v1145_v19 = vpop.f32.mrf.mxu1 }
 0x16c   :  { %v1132_v20 = vadd.f32 %v1131_v18, %v778_v3  ;;  %v1146_v21 = vadd.f32 %v1145_v19, %v779_v4 }
 0x16d   :  { %v1234_v22 = vsub.f32 0.0, %v1158_v16  ;;  %v1235_v23 = vsub.f32 0.0, %v1172_v17 }
 0x16e   :  { %v1240_v24 = vsub.f32 0.0, %v1132_v20  ;;  %v1241_v25 = vsub.f32 0.0, %v1146_v21 }
 0x16f   :  { %v1252_v26 = vmul.f32 1.442695, %v1234_v22  ;;  %v1254_v27 = vmul.f32 1.442695, %v1235_v23 }
 0x170   :  { %v1991_v28 = vpop.eup %1990  ;;  %v1264_v33 = vmul.f32 1.442695, %v1240_v24  ;;  %v1266_v35 = vmul.f32 1.442695, %v1241_v25 }
 0x171   :  { %v1993_v31 = vpop.eup %1992  ;;  %v1280_v32 = vadd.f32 1.0, %v1991_v28  ;;  %1994 = vpow2.f32 %v1252_v26 }
 0x172   :  { %v1281_v34 = vadd.f32 1.0, %v1993_v31  ;;  %1996 = vpow2.f32 %v1254_v27  ;;  %v1159_v36 = vpop.f32.mrf.mxu2  ;;  %v1173_v37 = vpop.f32.mrf.mxu3 }
 0x173   :  { %1998 = vrcp.f32 %v1280_v32  ;;  %v1160_v38 = vadd.f32 %v1159_v36, %v780_v10  ;;  %v1174_v39 = vadd.f32 %v1173_v37, %v781_v11  ;;  %v1185_v40 = vpop.f32.mrf.mxu0  ;;  %v1199_v41 = vpop.f32.mrf.mxu1 }
 0x174   :  { %2000 = vrcp.f32 %v1281_v34  ;;  %v1186_v42 = vadd.f32 %v1185_v40, %v782_v29  ;;  %v1200_v43 = vadd.f32 %v1199_v41, %v783_v30 }
 0x175   :  { %2002 = vpow2.f32 %v1264_v33  ;;  %v1242_v44 = vsub.f32 0.0, %v1160_v38  ;;  %v1243_v45 = vsub.f32 0.0, %v1174_v39 }
 0x176   :  { %2004 = vpow2.f32 %v1266_v35  ;;  %v1236_v46 = vsub.f32 0.0, %v1186_v42  ;;  %v1237_v47 = vsub.f32 0.0, %v1200_v43 }
 0x177   :  { %v1995_v48 = vpop.eup %1994  ;;  %v1268_v49 = vmul.f32 1.442695, %v1242_v44  ;;  %v1270_v54 = vmul.f32 1.442695, %v1243_v45 }
 0x178   :  { %v1997_v52 = vpop.eup %1996  ;;  %v1282_v53 = vadd.f32 1.0, %v1995_v48  ;;  %v1256_v57 = vmul.f32 1.442695, %v1236_v46  ;;  %v1258_v59 = vmul.f32 1.442695, %v1237_v47 }
 0x179   :  { %v1999_v55 = vpop.eup %1998  ;;  %v1283_v56 = vadd.f32 1.0, %v1997_v52  ;;  %2006 = vpow2.f32 %v1268_v49 }
 0x17a   :  { %v2001_v58 = vpop.eup %2000  ;;  %2008 = vrcp.f32 %v1282_v53  ;;  %v1213_v60 = vpop.f32.mrf.mxu2 }
 0x17b   :  { %v1227_v61 = vpop.f32.mrf.mxu3  ;;  %v2003_v62 = vpop.eup %2002  ;;  %v1312_v63 = vpack.c.bf16 %v2001_v58, %v1999_v55  ;;  %2010 = vrcp.f32 %v1283_v56  ;;  %v1214_v0 = vadd.f32 %v1213_v60, %v784_v50 }
 0x17c   :  { %v1228_v3 = vadd.f32 %v1227_v61, %v785_v51  ;;  %v1187_v4 = vpop.f32.mrf.mxu0  ;;  %v1201_v5 = vpop.f32.mrf.mxu1  ;;  %v1288_v1 = vadd.f32 1.0, %v2003_v62  ;;  %2012 = vpow2.f32 %v1270_v54 }
 0x17d   :  { %v2005_v2 = vpop.eup %2004  ;;  %v1188_v6 = vadd.f32 %v1187_v4, %v782_v29  ;;  %v1202_v7 = vadd.f32 %v1201_v5, %v783_v30  ;;  %1320 = vst [vmem:[%s2253_s5] sm:$0xff] %v1312_v63  ;;  %2014 = vpow2.f32 %v1256_v57  ;;  %v1238_v9 = vsub.f32 0.0, %v1214_v0 }
 0x17e   :  { %v1289_v8 = vadd.f32 1.0, %v2005_v2  ;;  %v1239_v10 = vsub.f32 0.0, %v1228_v3  ;;  %2016 = vrcp.f32 %v1288_v1 }
 0x17f   :  { %v1244_v11 = vsub.f32 0.0, %v1188_v6  ;;  %v1245_v12 = vsub.f32 0.0, %v1202_v7  ;;  %v2007_v13 = vpop.eup %2006  ;;  %v1260_v14 = vmul.f32 1.442695, %v1238_v9 }
 0x180   :  { %2018 = vrcp.f32 %v1289_v8  ;;  %v1262_v15 = vmul.f32 1.442695, %v1239_v10  ;;  %v2009_v16 = vpop.eup %2008  ;;  %v1290_v17 = vadd.f32 1.0, %v2007_v13 }
 0x181   :  { %2020 = vpow2.f32 %v1258_v59  ;;  %v1272_v18 = vmul.f32 1.442695, %v1244_v11  ;;  %v2011_v19 = vpop.eup %2010  ;;  %v1274_v22 = vmul.f32 1.442695, %v1245_v12 }
 0x182   :  { %2022 = vpow2.f32 %v1260_v14  ;;  %v2013_v20 = vpop.eup %2012  ;;  %v1313_v21 = vpack.c.bf16 %v2011_v19, %v2009_v16  ;;  %v1215_v23 = vpop.f32.mrf.mxu2 }
 0x183   :  { %2024 = vrcp.f32 %v1290_v17  ;;  %v1229_v24 = vpop.f32.mrf.mxu3  ;;  %v2015_v25 = vpop.eup %2014  ;;  %v1291_v26 = vadd.f32 1.0, %v2013_v20  ;;  %v1216_v27 = vadd.f32 %v1215_v23, %v784_v50 }
 0x184   :  { %2026 = vpow2.f32 %v1262_v15  ;;  %v1230_v28 = vadd.f32 %v1229_v24, %v785_v51  ;;  %v2017_v29 = vpop.eup %2016  ;;  %1321 = vst [vmem:[%s2253_s5 + $0x8] sm:$0xff] %v1313_v21  ;;  %v1284_v30 = vadd.f32 1.0, %v2015_v25 }
 0x185   :  { %2028 = vpow2.f32 %v1272_v18  ;;  %v1246_v32 = vsub.f32 0.0, %v1216_v27 }
 0x186   :  { %v2019_v31 = vpop.eup %2018  ;;  %2030 = vrcp.f32 %v1291_v26  ;;  %v1247_v35 = vsub.f32 0.0, %v1230_v28 }
 0x187   :  { %v2021_v33 = vpop.eup %2020  ;;  %v1316_v34 = vpack.c.bf16 %v2019_v31, %v2017_v29  ;;  %2032 = vrcp.f32 %v1284_v30  ;;  %v1276_v38 = vmul.f32 1.442695, %v1246_v32 }
 0x188   :  { %v2023_v36 = vpop.eup %2022  ;;  %v1285_v37 = vadd.f32 1.0, %v2021_v33  ;;  %2034 = vpow2.f32 %v1274_v22  ;;  %v1278_v44 = vmul.f32 1.442695, %v1247_v35 }
 0x189   :  { %v2025_v39 = vpop.eup %2024  ;;  %1324 = vst [vmem:[%s2253_s5 + $0x20] sm:$0xff] %v1316_v34  ;;  %v1286_v40 = vadd.f32 1.0, %v2023_v36 }
 0x18a   :  { %v2027_v41 = vpop.eup %2026  ;;  %2036 = vrcp.f32 %v1285_v37 }
 0x18b   :  { %v2029_v42 = vpop.eup %2028  ;;  %2038 = vrcp.f32 %v1286_v40  ;;  %v1287_v43 = vadd.f32 1.0, %v2027_v41 }
 0x18c   :  { %v2031_v45 = vpop.eup %2030  ;;  %v1292_v46 = vadd.f32 1.0, %v2029_v42  ;;  %2040 = vpow2.f32 %v1276_v38 }
 0x18d   :  { %v2033_v47 = vpop.eup %2032  ;;  %v1317_v48 = vpack.c.bf16 %v2031_v45, %v2025_v39  ;;  %2042 = vrcp.f32 %v1287_v43 }
 0x18e   :  { %v2035_v49 = vpop.eup %2034  ;;  %2044 = vrcp.f32 %v1292_v46 }
 0x18f   :  { %1325 = vst [vmem:[%s2253_s5 + $0x28] sm:$0xff] %v1317_v48  ;;  %v1293_v50 = vadd.f32 1.0, %v2035_v49  ;;  %2046 = vpow2.f32 %v1278_v44 }
 0x190   :  { %v2037_v51 = vpop.eup %2036 }
 0x191   :  { %v2039_v52 = vpop.eup %2038  ;;  %v1314_v53 = vpack.c.bf16 %v2037_v51, %v2033_v47  ;;  %2048 = vrcp.f32 %v1293_v50 }
 0x192   :  { %v2041_v54 = vpop.eup %2040 }
 0x193   :  { %v2043_v55 = vpop.eup %2042  ;;  %1322 = vst [vmem:[%s2253_s5 + $0x10] sm:$0xff] %v1314_v53  ;;  %v1294_v56 = vadd.f32 1.0, %v2041_v54 }
 0x194   :  { %v2045_v57 = vpop.eup %2044  ;;  %v1315_v58 = vpack.c.bf16 %v2043_v55, %v2039_v52 }
 0x195   :  { %v2047_v59 = vpop.eup %2046  ;;  %2050 = vrcp.f32 %v1294_v56 }
 0x196   :  { %1323 = vst [vmem:[%s2253_s5 + $0x18] sm:$0xff] %v1315_v58  ;;  %v1295_v60 = vadd.f32 1.0, %v2047_v59 }
 0x197   :  { %v2049_v61 = vpop.eup %2048 }
 0x198   :  { %v1318_v62 = vpack.c.bf16 %v2049_v61, %v2045_v57  ;;  %2052 = vrcp.f32 %v1295_v60 }
 0x19a   :  { %1326 = vst [vmem:[%s2253_s5 + $0x30] sm:$0xff] %v1318_v62 }
 0x19b   :  { %v2051_v63 = vpop.eup %2050 }
 0x19e   :  { %v2053_v0 = vpop.eup %2052 }
 0x19f   :  { %v1319_v3 = vpack.c.bf16 %v2053_v0, %v2051_v63 }
 0x1a1   :  { %1327 = vst [vmem:[%s2253_s5 + $0x38] sm:$0xff] %v1319_v3 }
 0x1a2   :  { %1336 = vsyncpa [#allocation3], 1 }
 0x1a3   :  { %1337 = vsyncpa [#allocation5], 1 }

</bundles_post_ra>
